<compile_context>
chip_gen: v7x
topology: tpu7x:2x2x1
jax: 0.10.0
libtpu: 0.0.40
codegen_flags: <defaults>
</compile_context>

<pallas_src>
import functools
from itertools import combinations

import jax
import jax.numpy as jnp
from jax.experimental import pallas as pl
from jax.experimental.pallas import tpu as pltpu

# F.normalize eps semantics: x / max(||x||, 1e-12) == x * rsqrt(max(||x||^2, 1e-24))
_EPS_SQ = 1e-24


def _mm_clip_kernel(a_idx_ref, b_idx_ref,           # scalar-prefetch pair table (SMEM)
                    a_ref, b_ref,                   # (tm, D) row tile / (B, D) resident
                    loss_ref,                       # (8, 128) per-pair output tile
                    m_col, l_col, row_acc, diag_acc,  # VMEM scratch
                    *, temperature: float, inv_bsz: float):
    del a_idx_ref, b_idx_ref  # only used inside the BlockSpec index_maps
    r = pl.program_id(1)
    nr = pl.num_programs(1)
    tm = a_ref.shape[0]
    inv_t = 1.0 / temperature

    # ---- reset per-pair accumulators at the first row tile of each pair ----
    @pl.when(r == 0)
    def _init():
        m_col[...] = jnp.full(m_col.shape, -jnp.inf, dtype=jnp.float32)
        l_col[...] = jnp.zeros(l_col.shape, dtype=jnp.float32)
        row_acc[...] = jnp.zeros(row_acc.shape, dtype=jnp.float32)
        diag_acc[...] = jnp.zeros(diag_acc.shape, dtype=jnp.float32)

    # ---- L2-normalize (f32 VPU + EUP rsqrt); fold 1/T into the "a" side ----
    a = a_ref[...].astype(jnp.float32)                               # (tm, D)
    b = b_ref[...].astype(jnp.float32)                               # (B,  D)
    a_n = a * (jax.lax.rsqrt(
        jnp.maximum(jnp.sum(a * a, axis=-1, keepdims=True), _EPS_SQ)) * inv_t)
    b_n = b * jax.lax.rsqrt(
        jnp.maximum(jnp.sum(b * b, axis=-1, keepdims=True), _EPS_SQ))

    # ---- positive-pair (diagonal) scores, computed directly (no BxB mask) ----
    start = r * tm
    if tm % 8 == 0:
        start = pl.multiple_of(start, 8)
    b_rows = b_ref[pl.ds(start, tm), :].astype(jnp.float32)          # rows matching tile
    b_rows_n = b_rows * jax.lax.rsqrt(
        jnp.maximum(jnp.sum(b_rows * b_rows, axis=-1, keepdims=True), _EPS_SQ))
    diag = jnp.sum(a_n * b_rows_n, axis=-1, keepdims=True)           # (tm,1), has 1/T

    # ---- logits tile on the MXU (bf16 operands, f32 accumulation) ----
    logits = jax.lax.dot_general(
        a_n.astype(jnp.bfloat16), b_n.astype(jnp.bfloat16),
        (((1,), (1,)), ((), ())),
        preferred_element_type=jnp.float32)                          # (tm, B)

    # ---- one shared exp for both softmax directions ----
    mt = jnp.max(jnp.max(logits, axis=1, keepdims=True), axis=0, keepdims=True)  # (1,1)
    p_exp = jnp.exp(logits - mt)                                                 # (tm,B)

    # a -> b : full row LSE is available inside this tile.
    lse_r = mt + jnp.log(jnp.sum(p_exp, axis=1, keepdims=True))      # (tm, 1)
    row_acc[...] += jnp.sum(lse_r - diag)
    diag_acc[...] += jnp.sum(diag)

    # b -> a : streaming (online) column LSE across row tiles.
    m_old = m_col[...]                                               # (1, B)
    m_new = jnp.maximum(m_old, mt)
    l_col[...] = (l_col[...] * jnp.exp(m_old - m_new)
                  + jnp.sum(p_exp, axis=0, keepdims=True) * jnp.exp(mt - m_new))
    m_col[...] = m_new

    # ---- finalize this pair on its last row tile ----
    @pl.when(r == nr - 1)
    def _finalize():
        lse_c = m_col[...] + jnp.log(l_col[...])                     # (1, B)
        loss_ab = jnp.sum(row_acc[...]) * inv_bsz
        loss_ba = (jnp.sum(lse_c) - jnp.sum(diag_acc[...])) * inv_bsz
        pair_loss = (loss_ab + loss_ba) * 0.5
        loss_ref[...] = jnp.zeros(loss_ref.shape, jnp.float32) + pair_loss


def _pick_row_tile(bsz: int) -> int:
    """Largest multiple-of-8 row tile dividing bsz that keeps the (tm, bsz)
    f32 logits + exp temporaries comfortably inside VMEM on every TPU gen."""
    max_rows = max(8, (16 * 1024 * 1024) // (8 * max(bsz, 1)))
    for cand in (1024, 512, 256, 128, 64, 32, 16, 8):
        if cand <= max_rows and bsz % cand == 0:
            return cand
    return bsz  # tiny / irregular batch: one full-height tile (== full dim, legal)


def mm_clip_loss(emb_dict: dict, temperature: float = 1.0,
                 row_tile: int | None = None) -> jax.Array:
    """JAX/Pallas equivalent of MMCLIPLoss.forward."""
    keys = list(emb_dict.keys())
    pairs = list(combinations(range(len(keys)), 2))
    if not pairs:
        return jnp.zeros((), jnp.float32)

    emb = jnp.stack([jnp.asarray(emb_dict[k]) for k in keys], axis=0)  # (M, B, D)
    _, bsz, dim = emb.shape

    # Zero-pad the embedding dim to a lane multiple (exact: zero lanes do not
    # change norms or dot products; keeps the MXU lane-dense).
    dim_p = ((dim + 127) // 128) * 128
    if dim_p != dim:
        emb = jnp.pad(emb, ((0, 0), (0, 0), (0, dim_p - dim)))

    a_idx = jnp.asarray([p[0] for p in pairs], dtype=jnp.int32)
    b_idx = jnp.asarray([p[1] for p in pairs], dtype=jnp.int32)
    num_pairs = len(pairs)

    if row_tile is not None:
        if bsz % row_tile != 0 or not (row_tile % 8 == 0 or row_tile == bsz):
            raise ValueError(f"invalid row_tile={row_tile} for batch={bsz}")
        tm = row_tile
    else:
        tm = _pick_row_tile(bsz)
    nr = bsz // tm

    est_bytes = (2 * (tm + bsz) * dim_p * 4        # double-buffered f32 input tiles
                 + 4 * tm * bsz * 4                # logits / exp temporaries
                 + (2 * bsz + 2 * 8 * 128 + 4) * 4)
    vmem_limit = int(min(64 * 1024 * 1024, max(32 * 1024 * 1024, 2 * est_bytes)))

    kernel = functools.partial(_mm_clip_kernel,
                               temperature=float(temperature),
                               inv_bsz=1.0 / float(bsz))

    out = pl.pallas_call(
        kernel,
        out_shape=jax.ShapeDtypeStruct((num_pairs, 8, 128), jnp.float32),
        grid_spec=pltpu.PrefetchScalarGridSpec(
            num_scalar_prefetch=2,
            grid=(num_pairs, nr),
            in_specs=[
                pl.BlockSpec((None, tm, dim_p), lambda p, r, ai, bi: (ai[p], r, 0)),
                pl.BlockSpec((None, bsz, dim_p), lambda p, r, ai, bi: (bi[p], 0, 0)),
            ],
            out_specs=pl.BlockSpec((None, 8, 128), lambda p, r, ai, bi: (p, 0, 0)),
            scratch_shapes=[
                pltpu.VMEM((1, bsz), jnp.float32),   # running column max
                pltpu.VMEM((1, bsz), jnp.float32),   # running column sum-exp
                pltpu.VMEM((1, 1), jnp.float32),     # sum_i (row LSE - diag)
                pltpu.VMEM((1, 1), jnp.float32),     # sum_i diag
            ],
        ),
        compiler_params=pltpu.CompilerParams(
            dimension_semantics=("parallel", "arbitrary"),
            vmem_limit_bytes=vmem_limit,
        ),
    )(a_idx, b_idx, emb, emb)

    return jnp.sum(out[:, 0, 0])


def _reference_loss(emb_dict: dict, temperature: float = 1.0) -> jax.Array:
    """Pure-JAX f32 reference for correctness checking."""
    keys = list(emb_dict.keys())
    total = jnp.float32(0.0)
    for mod_a, mod_b in combinations(keys, 2):
        a = emb_dict[mod_a].astype(jnp.float32)
        b = emb_dict[mod_b].astype(jnp.float32)
        a = a / jnp.maximum(jnp.linalg.norm(a, axis=-1, keepdims=True), 1e-12)
        b = b / jnp.maximum(jnp.linalg.norm(b, axis=-1, keepdims=True), 1e-12)
        logits = a @ b.T / temperature
        idx = jnp.arange(logits.shape[0])
        diag = logits[idx, idx]
        loss_ab = jnp.mean(jax.nn.logsumexp(logits, axis=1) - diag)
        loss_ba = jnp.mean(jax.nn.logsumexp(logits, axis=0) - diag)
        total = total + (loss_ab + loss_ba) * 0.5
    return total


if __name__ == "__main__":
    key = jax.random.PRNGKey(0)
    k1, k2, k3, k4, k5, k6 = jax.random.split(key, 6)

    # Config 1: lane-dense small shapes (B multiple of 8, D multiple of 128).
    emb_dict = {
        "image": jax.random.normal(k1, (8, 128), dtype=jnp.float32),
        "text": jax.random.normal(k2, (8, 128), dtype=jnp.float32),
        "audio": jax.random.normal(k3, (8, 128), dtype=jnp.float32),
    }
    loss = jax.block_until_ready(mm_clip_loss(emb_dict, temperature=1.0))
    ref = jax.block_until_ready(_reference_loss(emb_dict, temperature=1.0))
    assert jnp.allclose(loss, ref, rtol=2e-2, atol=2e-2), (loss, ref)

    # Config 2: exercises D-padding (32 -> 128), multi-row-tile streaming
    # column-LSE (B=16 with row_tile=8 -> 2 tiles) and temperature folding.
    emb_dict2 = {
        "image": jax.random.normal(k4, (16, 32), dtype=jnp.float32),
        "text": jax.random.normal(k5, (16, 32), dtype=jnp.float32),
        "audio": jax.random.normal(k6, (16, 32), dtype=jnp.float32),
    }
    loss2 = jax.block_until_ready(mm_clip_loss(emb_dict2, temperature=0.5, row_tile=8))
    ref2 = jax.block_until_ready(_reference_loss(emb_dict2, temperature=0.5))
    assert jnp.allclose(loss2, ref2, rtol=2e-2, atol=2e-2), (loss2, ref2)

    print("KERNEL_OK")
</pallas_src>

<mosaic_0001>
module attributes {stable_mosaic.version = 11 : i64} {
  func.func @_mm_clip_kernel(%arg0: i32, %arg1: i32, %arg2: memref<3xi32, #tpu.memory_space<smem>>, %arg3: memref<3xi32, #tpu.memory_space<smem>>, %arg4: memref<1x8x128xf32, #tpu.memory_space<vmem>>, %arg5: memref<1x8x128xf32, #tpu.memory_space<vmem>>, %arg6: memref<1x8x128xf32, #tpu.memory_space<vmem>>, %arg7: memref<1x8xf32, #tpu.memory_space<vmem>>, %arg8: memref<1x8xf32, #tpu.memory_space<vmem>>, %arg9: memref<1x1xf32, #tpu.memory_space<vmem>>, %arg10: memref<1x1xf32, #tpu.memory_space<vmem>>) attributes {dimension_semantics = [#tpu.dimension_semantics<parallel>, #tpu.dimension_semantics<arbitrary>], iteration_bounds = array<i64: 3, 1>, scalar_prefetch = 2 : i64, scratch_operands = 4 : i64, tpu.core_type = #tpu.core_type<tc>, window_params = [{transform_indices = @transform_0, window_bounds = array<i64: 1, 8, 128>}, {transform_indices = @transform_1, window_bounds = array<i64: 1, 8, 128>}, {transform_indices = @transform_2, window_bounds = array<i64: 1, 8, 128>}]} {
    %c0_i32 = arith.constant 0 : i32
    %0 = arith.cmpi eq, %arg1, %c0_i32 : i32
    %1 = arith.extui %0 : i1 to i32
    %c0_i32_0 = arith.constant 0 : i32
    %2 = arith.cmpi ne, %1, %c0_i32_0 : i32
    scf.if %2 {
      %cst_40 = arith.constant 0xFF800000 : f32
      %92 = vector.broadcast %cst_40 : f32 to vector<1x8xf32>
      %c0_41 = arith.constant 0 : index
      %c0_42 = arith.constant 0 : index
      %93 = vector.load %arg7[%c0_41, %c0_42] : memref<1x8xf32, #tpu.memory_space<vmem>>, vector<1x8xf32>
      tpu.vector_store %arg7[%c0_41, %c0_42], %92 {strides = array<i32>} : memref<1x8xf32, #tpu.memory_space<vmem>>, vector<1x8xf32>,
      %cst_43 = arith.constant 0.000000e+00 : f32
      %94 = vector.broadcast %cst_43 : f32 to vector<1x8xf32>
      %c0_44 = arith.constant 0 : index
      %c0_45 = arith.constant 0 : index
      %95 = vector.load %arg8[%c0_44, %c0_45] : memref<1x8xf32, #tpu.memory_space<vmem>>, vector<1x8xf32>
      tpu.vector_store %arg8[%c0_44, %c0_45], %94 {strides = array<i32>} : memref<1x8xf32, #tpu.memory_space<vmem>>, vector<1x8xf32>,
      %cst_46 = arith.constant 0.000000e+00 : f32
      %96 = vector.broadcast %cst_46 : f32 to vector<1x1xf32>
      %c0_47 = arith.constant 0 : index
      %c0_48 = arith.constant 0 : index
      %97 = vector.load %arg9[%c0_47, %c0_48] : memref<1x1xf32, #tpu.memory_space<vmem>>, vector<1x1xf32>
      tpu.vector_store %arg9[%c0_47, %c0_48], %96 {strides = array<i32>} : memref<1x1xf32, #tpu.memory_space<vmem>>, vector<1x1xf32>,
      %cst_49 = arith.constant 0.000000e+00 : f32
      %98 = vector.broadcast %cst_49 : f32 to vector<1x1xf32>
      %c0_50 = arith.constant 0 : index
      %c0_51 = arith.constant 0 : index
      %99 = vector.load %arg10[%c0_50, %c0_51] : memref<1x1xf32, #tpu.memory_space<vmem>>, vector<1x1xf32>
      tpu.vector_store %arg10[%c0_50, %c0_51], %98 {strides = array<i32>} : memref<1x1xf32, #tpu.memory_space<vmem>>, vector<1x1xf32>,
    } else {
    }
    %c0 = arith.constant 0 : index
    %c0_1 = arith.constant 0 : index
    %c0_2 = arith.constant 0 : index
    %3 = vector.load %arg4[%c0, %c0_1, %c0_2] : memref<1x8x128xf32, #tpu.memory_space<vmem>>, vector<1x8x128xf32>
    %4 = vector.shape_cast %3 : vector<1x8x128xf32> to vector<8x128xf32>
    %c0_3 = arith.constant 0 : index
    %c0_4 = arith.constant 0 : index
    %c0_5 = arith.constant 0 : index
    %5 = vector.load %arg5[%c0_3, %c0_4, %c0_5] : memref<1x8x128xf32, #tpu.memory_space<vmem>>, vector<1x8x128xf32>
    %6 = vector.shape_cast %5 : vector<1x8x128xf32> to vector<8x128xf32>
    %7 = arith.mulf %4, %4 : vector<8x128xf32>
    %cst = arith.constant dense<0.000000e+00> : vector<8xf32>
    %8 = vector.multi_reduction <add>, %7, %cst [1] : vector<8x128xf32> to vector<8xf32>
    %9 = vector.shape_cast %8 : vector<8xf32> to vector<8x1xf32>
    %cst_6 = arith.constant 1.000000e-24 : f32
    %10 = vector.broadcast %cst_6 : f32 to vector<8x1xf32>
    %11 = arith.maximumf %9, %10 : vector<8x1xf32>
    %12 = math.rsqrt %11 : vector<8x1xf32>
    %cst_7 = arith.constant 1.000000e+00 : f32
    %13 = vector.broadcast %cst_7 : f32 to vector<8x1xf32>
    %14 = arith.mulf %12, %13 : vector<8x1xf32>
    %15 = vector.broadcast %14 : vector<8x1xf32> to vector<8x128xf32>
    %16 = arith.mulf %4, %15 : vector<8x128xf32>
    %17 = arith.mulf %6, %6 : vector<8x128xf32>
    %cst_8 = arith.constant dense<0.000000e+00> : vector<8xf32>
    %18 = vector.multi_reduction <add>, %17, %cst_8 [1] : vector<8x128xf32> to vector<8xf32>
    %19 = vector.shape_cast %18 : vector<8xf32> to vector<8x1xf32>
    %cst_9 = arith.constant 1.000000e-24 : f32
    %20 = vector.broadcast %cst_9 : f32 to vector<8x1xf32>
    %21 = arith.maximumf %19, %20 : vector<8x1xf32>
    %22 = math.rsqrt %21 : vector<8x1xf32>
    %23 = vector.broadcast %22 : vector<8x1xf32> to vector<8x128xf32>
    %24 = arith.mulf %6, %23 : vector<8x128xf32>
    %c8_i32 = arith.constant 8 : i32
    %25 = arith.muli %arg1, %c8_i32 : i32
    %26 = tpu.assume_multiple %25, 8 : i32
    %c0_10 = arith.constant 0 : index
    %27 = arith.index_cast %26 : i32 to index
    %c0_11 = arith.constant 0 : index
    %28 = vector.load %arg5[%c0_10, %27, %c0_11] : memref<1x8x128xf32, #tpu.memory_space<vmem>>, vector<1x8x128xf32>
    %29 = vector.shape_cast %28 : vector<1x8x128xf32> to vector<8x128xf32>
    %30 = arith.mulf %29, %29 : vector<8x128xf32>
    %cst_12 = arith.constant dense<0.000000e+00> : vector<8xf32>
    %31 = vector.multi_reduction <add>, %30, %cst_12 [1] : vector<8x128xf32> to vector<8xf32>
    %32 = vector.shape_cast %31 : vector<8xf32> to vector<8x1xf32>
    %cst_13 = arith.constant 1.000000e-24 : f32
    %33 = vector.broadcast %cst_13 : f32 to vector<8x1xf32>
    %34 = arith.maximumf %32, %33 : vector<8x1xf32>
    %35 = math.rsqrt %34 : vector<8x1xf32>
    %36 = vector.broadcast %35 : vector<8x1xf32> to vector<8x128xf32>
    %37 = arith.mulf %29, %36 : vector<8x128xf32>
    %38 = arith.mulf %16, %37 : vector<8x128xf32>
    %cst_14 = arith.constant dense<0.000000e+00> : vector<8xf32>
    %39 = vector.multi_reduction <add>, %38, %cst_14 [1] : vector<8x128xf32> to vector<8xf32>
    %40 = vector.shape_cast %39 : vector<8xf32> to vector<8x1xf32>
    %41 = arith.truncf %16 : vector<8x128xf32> to vector<8x128xbf16>
    %42 = arith.truncf %24 : vector<8x128xf32> to vector<8x128xbf16>
    %cst_15 = arith.constant dense<0.000000e+00> : vector<8x8xf32>
    %43 = tpu.matmul %41, %42, %cst_15 {dimension_numbers = #tpu.dot_dimension_numbers<[1], [1], [0], [0], [0, 0, 1, 0], [], []>} : vector<8x128xbf16>, vector<8x128xbf16>, vector<8x8xf32> -> vector<8x8xf32>
    %cst_16 = arith.constant dense<0xFF800000> : vector<8xf32>
    %44 = vector.multi_reduction <maximumf>, %43, %cst_16 [1] : vector<8x8xf32> to vector<8xf32>
    %45 = vector.shape_cast %44 : vector<8xf32> to vector<8x1xf32>
    %cst_17 = arith.constant dense<0xFF800000> : vector<1xf32>
    %46 = vector.multi_reduction <maximumf>, %45, %cst_17 [0] : vector<8x1xf32> to vector<1xf32>
    %47 = vector.shape_cast %46 : vector<1xf32> to vector<1x1xf32>
    %48 = vector.broadcast %47 : vector<1x1xf32> to vector<8x8xf32>
    %49 = arith.subf %43, %48 : vector<8x8xf32>
    %50 = math.exp %49 : vector<8x8xf32>
    %cst_18 = arith.constant dense<0.000000e+00> : vector<8xf32>
    %51 = vector.multi_reduction <add>, %50, %cst_18 [1] : vector<8x8xf32> to vector<8xf32>
    %52 = vector.shape_cast %51 : vector<8xf32> to vector<8x1xf32>
    %53 = math.log %52 : vector<8x1xf32>
    %54 = vector.broadcast %47 : vector<1x1xf32> to vector<8x1xf32>
    %55 = arith.addf %54, %53 : vector<8x1xf32>
    %c0_19 = arith.constant 0 : index
    %c0_20 = arith.constant 0 : index
    %56 = vector.load %arg9[%c0_19, %c0_20] : memref<1x1xf32, #tpu.memory_space<vmem>>, vector<1x1xf32>
    %57 = arith.subf %55, %40 : vector<8x1xf32>
    %58 = vector.shape_cast %57 : vector<8x1xf32> to vector<1x8x1xf32>
    %cst_21 = arith.constant dense<0.000000e+00> : vector<1xf32>
    %59 = vector.multi_reduction <add>, %58, %cst_21 [1, 2] : vector<1x8x1xf32> to vector<1xf32>
    %60 = vector.shape_cast %59 : vector<1xf32> to vector<1x1x1xf32>
    %61 = vector.extract %60[0, 0, 0] : f32 from vector<1x1x1xf32>
    %62 = vector.broadcast %61 : f32 to vector<1x1xf32>
    %63 = arith.addf %56, %62 : vector<1x1xf32>
    %c0_22 = arith.constant 0 : index
    %c0_23 = arith.constant 0 : index
    %64 = vector.load %arg9[%c0_22, %c0_23] : memref<1x1xf32, #tpu.memory_space<vmem>>, vector<1x1xf32>
    tpu.vector_store %arg9[%c0_22, %c0_23], %63 {strides = array<i32>} : memref<1x1xf32, #tpu.memory_space<vmem>>, vector<1x1xf32>,
    %c0_24 = arith.constant 0 : index
    %c0_25 = arith.constant 0 : index
    %65 = vector.load %arg10[%c0_24, %c0_25] : memref<1x1xf32, #tpu.memory_space<vmem>>, vector<1x1xf32>
    %66 = vector.shape_cast %40 : vector<8x1xf32> to vector<1x8x1xf32>
    %cst_26 = arith.constant dense<0.000000e+00> : vector<1xf32>
    %67 = vector.multi_reduction <add>, %66, %cst_26 [1, 2] : vector<1x8x1xf32> to vector<1xf32>
    %68 = vector.shape_cast %67 : vector<1xf32> to vector<1x1x1xf32>
    %69 = vector.extract %68[0, 0, 0] : f32 from vector<1x1x1xf32>
    %70 = vector.broadcast %69 : f32 to vector<1x1xf32>
    %71 = arith.addf %65, %70 : vector<1x1xf32>
    %c0_27 = arith.constant 0 : index
    %c0_28 = arith.constant 0 : index
    %72 = vector.load %arg10[%c0_27, %c0_28] : memref<1x1xf32, #tpu.memory_space<vmem>>, vector<1x1xf32>
    tpu.vector_store %arg10[%c0_27, %c0_28], %71 {strides = array<i32>} : memref<1x1xf32, #tpu.memory_space<vmem>>, vector<1x1xf32>,
    %c0_29 = arith.constant 0 : index
    %c0_30 = arith.constant 0 : index
    %73 = vector.load %arg7[%c0_29, %c0_30] : memref<1x8xf32, #tpu.memory_space<vmem>>, vector<1x8xf32>
    %74 = vector.broadcast %47 : vector<1x1xf32> to vector<1x8xf32>
    %75 = arith.maximumf %73, %74 : vector<1x8xf32>
    %c0_31 = arith.constant 0 : index
    %c0_32 = arith.constant 0 : index
    %76 = vector.load %arg8[%c0_31, %c0_32] : memref<1x8xf32, #tpu.memory_space<vmem>>, vector<1x8xf32>
    %77 = arith.subf %73, %75 : vector<1x8xf32>
    %78 = math.exp %77 : vector<1x8xf32>
    %79 = arith.mulf %76, %78 : vector<1x8xf32>
    %cst_33 = arith.constant dense<0.000000e+00> : vector<8xf32>
    %80 = vector.multi_reduction <add>, %50, %cst_33 [0] : vector<8x8xf32> to vector<8xf32>
    %81 = vector.shape_cast %80 : vector<8xf32> to vector<1x8xf32>
    %82 = vector.broadcast %47 : vector<1x1xf32> to vector<1x8xf32>
    %83 = arith.subf %82, %75 : vector<1x8xf32>
    %84 = math.exp %83 : vector<1x8xf32>
    %85 = arith.mulf %81, %84 : vector<1x8xf32>
    %86 = arith.addf %79, %85 : vector<1x8xf32>
    %c0_34 = arith.constant 0 : index
    %c0_35 = arith.constant 0 : index
    %87 = vector.load %arg8[%c0_34, %c0_35] : memref<1x8xf32, #tpu.memory_space<vmem>>, vector<1x8xf32>
    tpu.vector_store %arg8[%c0_34, %c0_35], %86 {strides = array<i32>} : memref<1x8xf32, #tpu.memory_space<vmem>>, vector<1x8xf32>,
    %c0_36 = arith.constant 0 : index
    %c0_37 = arith.constant 0 : index
    %88 = vector.load %arg7[%c0_36, %c0_37] : memref<1x8xf32, #tpu.memory_space<vmem>>, vector<1x8xf32>
    tpu.vector_store %arg7[%c0_36, %c0_37], %75 {strides = array<i32>} : memref<1x8xf32, #tpu.memory_space<vmem>>, vector<1x8xf32>,
    %c0_i32_38 = arith.constant 0 : i32
    %89 = arith.cmpi eq, %arg1, %c0_i32_38 : i32
    %90 = arith.extui %89 : i1 to i32
    %c0_i32_39 = arith.constant 0 : i32
    %91 = arith.cmpi ne, %90, %c0_i32_39 : i32
    scf.if %91 {
      %c0_40 = arith.constant 0 : index
      %c0_41 = arith.constant 0 : index
      %92 = vector.load %arg7[%c0_40, %c0_41] : memref<1x8xf32, #tpu.memory_space<vmem>>, vector<1x8xf32>
      %c0_42 = arith.constant 0 : index
      %c0_43 = arith.constant 0 : index
      %93 = vector.load %arg8[%c0_42, %c0_43] : memref<1x8xf32, #tpu.memory_space<vmem>>, vector<1x8xf32>
      %94 = math.log %93 : vector<1x8xf32>
      %95 = arith.addf %92, %94 : vector<1x8xf32>
      %c0_44 = arith.constant 0 : index
      %c0_45 = arith.constant 0 : index
      %96 = vector.load %arg9[%c0_44, %c0_45] : memref<1x1xf32, #tpu.memory_space<vmem>>, vector<1x1xf32>
      %97 = vector.shape_cast %96 : vector<1x1xf32> to vector<1x1x1xf32>
      %cst_46 = arith.constant dense<0.000000e+00> : vector<1xf32>
      %98 = vector.multi_reduction <add>, %97, %cst_46 [1, 2] : vector<1x1x1xf32> to vector<1xf32>
      %99 = vector.shape_cast %98 : vector<1xf32> to vector<1x1x1xf32>
      %100 = vector.extract %99[0, 0, 0] : f32 from vector<1x1x1xf32>
      %cst_47 = arith.constant 1.250000e-01 : f32
      %101 = arith.mulf %100, %cst_47 : f32
      %102 = vector.shape_cast %95 : vector<1x8xf32> to vector<1x1x8xf32>
      %cst_48 = arith.constant dense<0.000000e+00> : vector<1xf32>
      %103 = vector.multi_reduction <add>, %102, %cst_48 [1, 2] : vector<1x1x8xf32> to vector<1xf32>
      %104 = vector.shape_cast %103 : vector<1xf32> to vector<1x1x1xf32>
      %105 = vector.extract %104[0, 0, 0] : f32 from vector<1x1x1xf32>
      %c0_49 = arith.constant 0 : index
      %c0_50 = arith.constant 0 : index
      %106 = vector.load %arg10[%c0_49, %c0_50] : memref<1x1xf32, #tpu.memory_space<vmem>>, vector<1x1xf32>
      %107 = vector.shape_cast %106 : vector<1x1xf32> to vector<1x1x1xf32>
      %cst_51 = arith.constant dense<0.000000e+00> : vector<1xf32>
      %108 = vector.multi_reduction <add>, %107, %cst_51 [1, 2] : vector<1x1x1xf32> to vector<1xf32>
      %109 = vector.shape_cast %108 : vector<1xf32> to vector<1x1x1xf32>
      %110 = vector.extract %109[0, 0, 0] : f32 from vector<1x1x1xf32>
      %111 = arith.subf %105, %110 : f32
      %cst_52 = arith.constant 1.250000e-01 : f32
      %112 = arith.mulf %111, %cst_52 : f32
      %113 = arith.addf %101, %112 : f32
      %cst_53 = arith.constant 5.000000e-01 : f32
      %114 = arith.mulf %113, %cst_53 : f32
      %cst_54 = arith.constant 0.000000e+00 : f32
      %115 = vector.broadcast %cst_54 : f32 to vector<8x128xf32>
      %116 = vector.broadcast %114 : f32 to vector<8x128xf32>
      %117 = arith.addf %115, %116 : vector<8x128xf32>
      %c0_55 = arith.constant 0 : index
      %c0_56 = arith.constant 0 : index
      %c0_57 = arith.constant 0 : index
      %118 = vector.load %arg6[%c0_55, %c0_56, %c0_57] : memref<1x8x128xf32, #tpu.memory_space<vmem>>, vector<1x8x128xf32>
      %119 = vector.shape_cast %118 : vector<1x8x128xf32> to vector<8x128xf32>
      %120 = vector.shape_cast %117 : vector<8x128xf32> to vector<1x8x128xf32>
      tpu.vector_store %arg6[%c0_55, %c0_56, %c0_57], %120 {strides = array<i32>} : memref<1x8x128xf32, #tpu.memory_space<vmem>>, vector<1x8x128xf32>,
    } else {
    }
    return
  }
  func.func @transform_0(%arg0: i32, %arg1: i32, %arg2: memref<3xi32, #tpu.memory_space<smem>>, %arg3: memref<3xi32, #tpu.memory_space<smem>>) -> (i32, i32, i32) {
    %0 = arith.index_cast %arg0 : i32 to index
    %1 = memref.load %arg2[%0] : memref<3xi32, #tpu.memory_space<smem>>
    %c0_i32 = arith.constant 0 : i32
    %c0_i32_0 = arith.constant 0 : i32
    return %1, %arg1, %c0_i32 : i32, i32, i32
  }
  func.func @transform_1(%arg0: i32, %arg1: i32, %arg2: memref<3xi32, #tpu.memory_space<smem>>, %arg3: memref<3xi32, #tpu.memory_space<smem>>) -> (i32, i32, i32) {
    %0 = arith.index_cast %arg0 : i32 to index
    %1 = memref.load %arg3[%0] : memref<3xi32, #tpu.memory_space<smem>>
    %c0_i32 = arith.constant 0 : i32
    %c0_i32_0 = arith.constant 0 : i32
    %c0_i32_1 = arith.constant 0 : i32
    return %1, %c0_i32, %c0_i32_0 : i32, i32, i32
  }
  func.func @transform_2(%arg0: i32, %arg1: i32, %arg2: memref<3xi32, #tpu.memory_space<smem>>, %arg3: memref<3xi32, #tpu.memory_space<smem>>) -> (i32, i32, i32) {
    %c0_i32 = arith.constant 0 : i32
    %c0_i32_0 = arith.constant 0 : i32
    %c0_i32_1 = arith.constant 0 : i32
    return %arg0, %c0_i32, %c0_i32_0 : i32, i32, i32
  }
}

</mosaic_0001>

<bundles_post_ra>
// kernel: tpu_custom_call.1
= control target key start
LH: loop header
LB: loop body
LE: loop exit
PB: predicated region body
PF: predicated region fallthrough
CT: control target
= control target key end

     0   :  { %s1303_s0 = inlined_call_operand.hbm [shape: s32[3], index: 0, kind: input, shape index: {}]   ;;  %s1304_s2 = inlined_call_operand.hbm [shape: f32[3,8,128], index: 2, kind: input, shape index: {}]   ;;  %s1305_s3 = inlined_call_operand.hbm [shape: f32[3,8,128], index: 3, kind: input, shape index: {}]   ;;  %s1306_s4 = inlined_call_operand.hbm [shape: f32[3,8,128], index: 4, kind: output, shape index: {}]   ;;  %s1307_s1 = inlined_call_operand.vmem [shape: s32[3], index: 1, kind: input, shape index: {}]  }
   0x1   :  { %1314 = sst [smem:[#allocation27_spill]] %s1304_s2  ;;  %s707_s17 = scalar_lea.hbm %s1303_s0, 16 }
   0x2   :  { %p708_p0 = scmp.ne.s32.totalorder %s1303_s0, %s707_s17  ;;  %p711_p1 = scmp.lt.u32.totalorder %s707_s17, %s1303_s0 }
   0x4   :  { %p713_p2 = pnand %p711_p1, %p708_p0 }
   0x6   :  { %716 = shalt.err (!%p713_p2)  }
   0x7   :  { %s927_s22 = smov [#allocation7]   ;;  %s11_s27 = sshll.u32 %s1307_s1, 4  ;;  %s12_s27 = int_to_ptr.vmem [resolvable:$true] %s11_s27 }
   0x8   :  { %10 = dma.hbm_to_smem %s1303_s0, 16, %s927_s22, [#allocation6] }
   0x9   :  { %s717_s28 = scalar_lea.vmem %s12_s27, 16  ;;  %p722_p4 = scmp.lt.s32.totalorder %s12_s27, %s12_s27 }
   0xa   :  { %p718_p3 = scmp.ne.s32.totalorder %s12_s27, %s717_s28  ;;  %p723_p5 = scmp.lt.s32.totalorder %s717_s28, %s717_s28 }
   0xc   :  { %p724_p6 = por %p723_p5, %p722_p4 }
   0xe   :  { %p725_p7 = pnand %p724_p6, %p718_p3 }
  0x10   :  { %728 = shalt.err (!%p725_p7)  }
  0x11   :  { %s928_s29 = smov [#allocation8]  }
  0x12   :  { %14 = dma.vmem_to_smem %s12_s27, 16, %s928_s29, [#allocation6] }
  0x13   :  { %865 = dma.done.wait [#allocation6], 32 }
  0x14   :  { %866 = vsyncadd [#allocation6], 4294967264 }
  0x15   :  { %16 = sfence }
  0x16   :  { %17 = vsyncpa [#allocation10], 0 }
  0x17   :  { %19 = vsyncpa [#allocation10 + $0x1], 0 }
  0x18   :  { %20 = vsyncpa [#allocation13], 0 }
  0x19   :  { %22 = vsyncpa [#allocation13 + $0x1], 0 }
  0x1a   :  { %23 = vsyncpa [#allocation11], 0 }
  0x1b   :  { %25 = vsyncpa [#allocation11 + $0x1], 0  ;;  %s975_s0 = smov 0   ;;  %s977_s1 = smov 0  }
  0x1c   :  { %s979_s30 = smov 0   ;;  %s981_s5 = smov 0  }
  0x1d   :  { %s983_s6 = smov 0   ;;  %s985_s7 = smov 0  }
  0x1e   :  { %s987_s8 = smov 0   ;;  %s989_s9 = smov 0  }
  0x1f   :  { %s991_s10 = smov 0   ;;  %s993_s11 = smov 0  }
  0x20   :  { %s995_s12 = smov 0   ;;  %s997_s13 = smov 0  }
  0x21 LB: > { %1315 = sst [smem:[#allocation23_spill]] %s889_s30  ;;  %s529_s14 = sadd.s32 4294967295, %s925_s13   ;;  %s925_s13 = sphi %s997_s13, %s31_s13   ;;  %s921_s12 = sphi %s995_s12, %s1350_s12   ;;  %s917_s11 = sphi %s993_s11, %s1349_s11   ;;  %s913_s10 = sphi %s991_s10, %s1341_s10   ;;  %s909_s9 = sphi %s989_s9, %s1348_s9   ;;  %s905_s8 = sphi %s987_s8, %s1347_s8   ;;  %s901_s7 = sphi %s985_s7, %s1346_s7   ;;  %s897_s6 = sphi %s983_s6, %s1345_s6   ;;  %s893_s5 = sphi %s981_s5, %s1344_s5   ;;  %s889_s30 = sphi %s979_s30, %s1339_s30   ;;  %s885_s1 = sphi %s977_s1, %s1343_s1   ;;  %s881_s0 = sphi %s975_s0, %s1342_s0  }
  0x22   : > { %1316 = sst [smem:[#allocation24_spill]] %s913_s10  ;;  %s530_s15 = sadd.s32 4294967294, %s925_s13  }
  0x23   : > { %s43_s16 = sadd.s32 1, %s921_s12  ;;  %s47_s17 = sld [smem:[#allocation7 + %s921_s12]] }
  0x24   : > { %p45_p8 = scmp.ge.s32.totalorder %s43_s16, 3  ;;  %s54_s18 = sadd.s32 1, %s913_s10 }
  0x25   : > { %p61_p9 = scmp.ne.s32.totalorder %s913_s10, %s909_s9  ;;  %p1311_p10 = scmp.eq.s32.totalorder %s925_s13, 0 }
  0x26   : > { %s1352_s16 = smov (%p45_p8, %s43_s16), 0  ;;  %p67_p12 = scmp.ne.s32.totalorder %s909_s9, %s905_s8 }
  0x27   : > { %p1045_p11 = por %p1311_p10, %p61_p9  ;;  %s48_s20 = sld [smem:[#allocation7 + %s1352_s16]] }
  0x28   : > { %p1051_p13 = scmp.eq.s32.totalorder %s529_s14, 0  ;;  %s105_s22 = ssub.s32 %s921_s12, %s1352_s16 }
  0x29   : > { %s108_s23 = sadd.s32 1, %s889_s30  ;;  %p106_p1 = scmp.eq.s32.totalorder %s105_s22, 0 }
  0x2a   : > { %p1060_p0 = por %p1051_p13, %p67_p12  ;;  %p118_p2 = scmp.ne.s32.totalorder %s889_s30, %s885_s1 }
  0x2b   : > { %p119_p3 = scmp.eq.s32.totalorder %s529_s14, 2  ;;  %p124_p5 = scmp.ne.s32.totalorder %s885_s1, %s881_s0 }
  0x2c   : > { %s1319_s24 = scalar_select %p1060_p0, 1, 0 }
  0x2d   : > { %s1067_s25 = scalar_select %p106_p1, %s889_s30, %s108_s23  }
  0x2e   : > { %p1069_p4 = por %p119_p3, %p118_p2  ;;  %s49_s27 = ssub.s32 %s47_s17, %s48_s20 }
  0x2f   : > { %1320 = sst [smem:[#allocation25_spill]] %s1067_s25  ;;  %p125_p6 = scmp.eq.s32.totalorder %s530_s15, 2 }
  0x30   : > { %s1321_s26 = scalar_select %p1069_p4, 1, 0 }
  0x31   : > { %p52_p7 = scmp.eq.s32.totalorder %s49_s27, 0  ;;  %p1075_p8 = por %p125_p6, %p124_p5 }
  0x32   : > { %p1310_p9 = scmp.lt.s32.totalorder %s925_s13, 3  ;;  %s145_s8 = sand.u32 1, %s913_s10  }
  0x33   : > { %s1322_s28 = scalar_select %p1075_p8, 1, 0 }
  0x34   : > { %s1081_s29 = scalar_select %p52_p7, %s913_s10, %s54_s18  }
  0x35   : > { %p1088_p12 = pnand %p1310_p9, %p1045_p11  ;;  %s533_s17 = sshll.u32 %s145_s8, 3 }
  0x36   : > { %1323 = sst [smem:[#allocation26_spill]] %s1081_s29  ;;  %s149_s18 = scalar_lea.vmem [#allocation9], %s533_s17 }
  0x37   : > { %s563_s15 = scalar_select %p1045_p11, [#allocation7], [#allocation15] }
  0x38   : > { %s564_s20 = scalar_select %p1045_p11, %s921_s12, 0 }
  0x39   : > { %s1354_s15 = smov (!%p1310_p9, %s563_s15), [#allocation17]  ;;  %s158_s22 = sshll.u32 %s149_s18, 4  ;;  %s1102_s22 = int_to_ptr.vmem [resolvable:$true] %s158_s22 }
  0x3a   : > { %s1356_s20 = smov (!%p1310_p9, %s564_s20), 0  ;;  %p537_p1 = scmp.ge.s32.totalorder %s925_s13, 1 }
  0x3b   : > { %s150_s23 = sld [smem:[%s1354_s15 + %s1356_s20]]  ;;  %p182_p2 = scmp.lt.s32.totalorder %s925_s13, 4 }
  0x3c   : > { %s1110_s29 = sld [smem:[#allocation8 + %s921_s12]]  ;;  %s146_s15 = scalar_lea.sflag [#allocation10], %s145_s8 }
  0x3d   : > { %p1105_p3 = pnand %p537_p1, %p182_p2  ;;  %s1113_s19 = sld [smem:[#allocation8 + %s1352_s16]] }
  0x3e   : > { %s1326_s2 = sld [smem:[#allocation27_spill]]  ;;  %p731_p6 = pneg %p1088_p12 }
  0x3f   : > { %s1325_s27 = scalar_select %p1105_p3, 1, 0 }
  0x41   : > { %s534_s10 = sshll.u32 %s150_s23, 7 }
  0x44   : > { %s1118_s17 = scalar_lea.hbm %s1326_s2, %s534_s10  ;;  %s734_s30 = scalar_lea.hbm %s1326_s2, 384 }
  0x45   : > { %s729_s20 = scalar_lea.hbm %s1118_s17, 128  ;;  %p735_p2 = scmp.lt.u32.totalorder %s1118_s17, %s1326_s2 }
  0x46   : > { %p730_p5 = scmp.ne.s32.totalorder %s1118_s17, %s729_s20  ;;  %p736_p9 = scmp.lt.u32.totalorder %s734_s30, %s729_s20 }
  0x47   : > { %p738_p11 = scmp.lt.u32.totalorder %s729_s20, %s1118_s17 }
  0x48   : > { %p732_p7 = pnand %p731_p6, %p730_p5  ;;  %p737_p10 = por %p736_p9, %p735_p2 }
  0x4a   : > { %p733_p1 = pneg %p732_p7  ;;  %p739_p8 = por %p738_p11, %p737_p10 }
  0x4c   : > { %p740_p4 = pnand %p739_p8, %p733_p1 }
  0x4e   : > { %743 = shalt.err (!%p740_p4)
}
  0x4f   : > { %s744_s8 = scalar_lea.vmem %s1102_s22, 128  ;;  %s929_s18 = smov [#allocation9]  }
  0x50   : > { %p745_p5 = scmp.ne.s32.totalorder %s1102_s22, %s744_s8  ;;  %s749_s23 = sshll.u32 %s929_s18, 4  ;;  %s750_s23 = int_to_ptr.vmem [resolvable:$false] %s749_s23 }
  0x51   : > { %s751_s10 = scalar_lea.vmem %s750_s23, 256  ;;  %p752_p3 = scmp.lt.s32.totalorder %s1102_s22, %s750_s23 }
  0x52   : > { %p747_p7 = pnand %p745_p5, %p731_p6  ;;  %p753_p9 = scmp.lt.s32.totalorder %s751_s10, %s744_s8 }
  0x54   : > { %p748_p0 = pneg %p747_p7  ;;  %p754_p2 = por %p753_p9, %p752_p3 }
  0x56   : > { %p755_p10 = pnand %p754_p2, %p748_p0 }
  0x58   : > { %758 = shalt.err (!%p755_p10)
}
  0x59   : > { %578 = dma.hbm_to_vmem [thread:$0]  (!%p1088_p12), %s1118_s17, 128, %s1102_s22, %s146_s15  }
  0x5a   : > { %p95_p0 = scmp.ne.s32.totalorder %s897_s6, %s893_s5  ;;  %s82_s14 = sadd.s32 1, %s901_s7 }
  0x5b   : > { %p1327_p4 = scmp.eq.s32.totalorder %s925_s13, 0  ;;  %p1328_p8 = scmp.ne.s32.totalorder %s901_s7, %s897_s6 }
  0x5c   : > { %s79_s20 = ssub.s32 %s1110_s29, %s1113_s19  ;;  %p1159_p11 = por %p95_p0, %p1051_p13 }
  0x5d   : > { %p91_p3 = por %p1328_p8, %p1327_p4  ;;  %p80_p6 = scmp.eq.s32.totalorder %s79_s20, 0 }
  0x5e   : > { %s165_s25 = sand.u32 1, %s901_s7   ;;  %p1330_p1 = scmp.lt.s32.totalorder %s925_s13, 3 }
  0x5f   : > { %s1171_s22 = scalar_select %p80_p6, %s901_s7, %s82_s14  }
  0x60   : > { %p1166_p5 = pnand %p1330_p1, %p91_p3  ;;  %s535_s5 = sshll.u32 %s165_s25, 3 }
  0x61   : > { %s566_s17 = scalar_select %p91_p3, [#allocation8], [#allocation16] }
  0x62   : > { %s567_s15 = scalar_select %p91_p3, %s921_s12, 0 }
  0x63   : > { %p1332_p12 = pmov %p1330_p1  ;;  %p1333_p13 = pmov %p1330_p1 }
  0x64   : > { %s169_s29 = scalar_lea.vmem [#allocation12], %s535_s5  ;;  %s166_s14 = scalar_lea.sflag [#allocation13], %s165_s25 }
  0x65   : > { %s1358_s17 = smov (!%p1332_p12, %s566_s17), [#allocation18]  ;;  %s1360_s15 = smov (!%p1333_p13, %s567_s15), 0 }
  0x66   : > { %s170_s21 = sld [smem:[%s1358_s17 + %s1360_s15]]  ;;  %s177_s19 = sshll.u32 %s169_s29, 4  ;;  %s1178_s19 = int_to_ptr.vmem [resolvable:$true] %s177_s19 }
  0x67   : > { %p761_p9 = pneg %p1166_p5  ;;  %s764_s15 = scalar_lea.hbm %s1305_s3, 384 }
  0x6c   : > { %s536_s18 = sshll.u32 %s170_s21, 7 }
  0x6d   : > { %s1183_s20 = scalar_lea.hbm %s1305_s3, %s536_s18 }
  0x6e   : > { %s759_s2 = scalar_lea.hbm %s1183_s20, 128  ;;  %p765_p0 = scmp.lt.u32.totalorder %s1183_s20, %s1305_s3 }
  0x6f   : > { %p760_p7 = scmp.ne.s32.totalorder %s1183_s20, %s759_s2  ;;  %p766_p4 = scmp.lt.u32.totalorder %s764_s15, %s759_s2 }
  0x70   : > { %p768_p3 = scmp.lt.u32.totalorder %s759_s2, %s1183_s20 }
  0x71   : > { %p762_p2 = pnand %p761_p9, %p760_p7  ;;  %p767_p8 = por %p766_p4, %p765_p0 }
  0x73   : > { %p763_p10 = pneg %p762_p2  ;;  %p769_p6 = por %p768_p3, %p767_p8 }
  0x75   : > { %p770_p1 = pnand %p769_p6, %p763_p10 }
  0x77   : > { %773 = shalt.err (!%p770_p1)
}
  0x78   : > { %s774_s25 = scalar_lea.vmem %s1178_s19, 128  ;;  %s930_s18 = smov [#allocation12]  }
  0x79   : > { %p775_p12 = scmp.ne.s32.totalorder %s1178_s19, %s774_s25  ;;  %s779_s23 = sshll.u32 %s930_s18, 4  ;;  %s780_s23 = int_to_ptr.vmem [resolvable:$false] %s779_s23 }
  0x7a   : > { %s781_s10 = scalar_lea.vmem %s780_s23, 256  ;;  %p782_p2 = scmp.lt.s32.totalorder %s1178_s19, %s780_s23 }
  0x7b   : > { %p777_p13 = pnand %p775_p12, %p761_p9  ;;  %p783_p0 = scmp.lt.s32.totalorder %s781_s10, %s774_s25 }
  0x7d   : > { %p778_p7 = pneg %p777_p13  ;;  %p784_p4 = por %p783_p0, %p782_p2 }
  0x7f   : > { %p785_p8 = pnand %p784_p4, %p778_p7 }
  0x81   : > { %788 = shalt.err (!%p785_p8)
}
  0x82   : > { %583 = dma.hbm_to_vmem [thread:$0]  (!%p1166_p5), %s1183_s20, 128, %s1178_s19, %s166_s14  }
  0x83   : > { %p1334_p10 = scmp.ne.s32.totalorder %s1325_s27, 0 }
  0x84   : > { %s188_s2 = sand.u32 (!%p1334_p10), 1, %s909_s9   ;;  %p1335_p9 = scmp.ne.s32.totalorder (!%p1334_p10), %s1319_s24, 0 }
  0x85   : > { %186 = sbr.rel (%p1334_p10) target bundleno = 1148 (0x47c), region = 28  ;;  %s538_s5 = sshll.u32 (!%p1334_p10), %s188_s2, 3 }
  0x86   : > { %s189_s17 = scalar_lea.sflag (!%p1334_p10), [#allocation10], %s188_s2  ;;  %s192_s15 = scalar_lea.vmem (!%p1334_p10), [#allocation9], %s538_s5 }
  0x8c   : > { %868 = dma.done.wait (%p1335_p9), %s189_s17, 128  }
  0x8d   : > { %870 = vsyncadd (%p1335_p9), %s189_s17, 4294967168  ;;  %s197_s8 = sand.u32 1, %s897_s6  }
  0x8e   : > { %s539_s21 = sshll.u32 %s197_s8, 3  ;;  %s198_s29 = scalar_lea.sflag [#allocation13], %s197_s8 }
  0x8f   : > { %s201_s19 = scalar_lea.vmem [#allocation12], %s539_s21 }
  0x90   : > { %872 = dma.done.wait (%p1159_p11), %s198_s29, 128  }
  0x91   : > { %874 = vsyncadd (%p1159_p11), %s198_s29, 4294967168  ;;  %v241_v0 = vld [vmem:[%s201_s19] sm:$0xff]  ;;  %v240_v1 = vld [vmem:[%s192_s15] sm:$0xff]  ;;  %vm237_vm0 = vcmask 0   ;;  %v931_v4 = vmov 0.0   ;;  %vm932_vm1 = vmmov 0  }
  0x92   : > { %v248_v2 = vmul.f32 %v241_v0, %v241_v0  ;;  %v242_v3 = vmul.f32 %v240_v1, %v240_v1  ;;  %238 = vst.msk [vmem:[#allocation4] sm:$0x1] %vm237_vm0, %v931_v4  ;;  %239 = vst.msk [vmem:[#allocation5] sm:$0x1] %vm237_vm0, %v931_v4  ;;  %547 = vmatprep.subr.bf16.mxu0 %v931_v4  ;;  %549 = vmatprep.mubr.msk.bf16.mxu0 %vm932_vm1, %v931_v4  ;;  %vm308_vm2 = vcmask 64512   ;;  %vm234_vm3 = vcmask 57344  }
  0x93   : > { %v933_v20 = vmov -inf   ;;  %236 = vst.msk [vmem:[#allocation3] sm:$0x1] %vm234_vm3, %v931_v4  ;;  %vm329_vm4 = vcmask 7168   ;;  %s224_s30 = sand.u32 1, %s885_s1   ;;  %s542_s5 = sshll.u32 %s917_s11, 7 }
  0x94   : > { %249 = vadd.xlane.f32.xlu0 %v248_v2  ;;  %235 = vst.msk [vmem:[#allocation2] sm:$0x1] %vm234_vm3, %v933_v20  ;;  %s540_s25 = sshll.u32 %s224_s30, 3  ;;  %p1336_p5 = scmp.ne.s32.totalorder %s1321_s26, 0 }
  0x95   : > { %s226_s15 = scalar_lea.vmem [#allocation14], %s540_s25  ;;  %s934_s11 = smov [#allocation14]  }
  0x96   : > { %s425_s8 = sshll.u32 %s226_s15, 4  ;;  %s1240_s8 = int_to_ptr.vmem [resolvable:$true] %s425_s8 }
  0x98   : > { %243 = vadd.xlane.f32.xlu0 %v242_v3 }
  0x9a   : > { %v360_v49 = vld [vmem:[#allocation3] sm:$0x1] }
  0x9b   : > { %v358_v29 = vld [vmem:[#allocation2] sm:$0x1] }
 0x121   : > { %v250_v5 = vpop.xlane.xlu0 %249 }
 0x122   : > { %v251_v6 = vmax.f32 %v250_v5, 1e-24 }
 0x124   : > { %691 = vrsqrt.f32 %v251_v6 }
 0x125   : > { %v244_v7 = vpop.xlane.xlu0 %243 }
 0x126   : > { %v245_v8 = vmax.f32 %v244_v7, 1e-24 }
 0x128   : > { %693 = vrsqrt.f32 %v245_v8 }
 0x12e   : > { %v692_v9 = vpop.eup %691 }
 0x12f   : > { %v253_v10 = vmul.f32 %v692_v9, %v241_v0 }
 0x131   : > { %v267_v11 = vpack.c.bf16 %v253_v10, %v253_v10 }
 0x132   : > { %v694_v12 = vpop.eup %693 }
 0x133   : > { %548 = vmatpush3.bf16.xpose.msra.mxu0 %v267_v11  ;;  %v247_v13 = vmul.f32 %v694_v12, %v240_v1 }
 0x135   : > { %v266_v14 = vpack.c.bf16 %v247_v13, %v247_v13 }
 0x13a   : > { %550 = vmatmul.mubr.bf16.vlgmr.msra.gmra.mrb[0].mxu0 %v266_v14 }
 0x20d   : > { %v302_v15 = vpop.f32.mrb[0].mxu0 }
 0x20e   : > { %v551_v16 = vpop.f32.mrb[1].mxu0  ;;  %v309_v17 = vsel %vm308_vm2, %v302_v15, -inf }
 0x20f   : > { %310 = vmax.xlane.f32.xlu1 %v309_v17  ;;  %v305_v18 = vpop.f32.mrb[2].mxu0 }
 0x210   : > { %v552_v19 = vpop.f32.mrb[3].mxu0 }
 0x213   : > { %258 = vadd.xlane.f32.xlu1 %v248_v2 }
 0x29c   : > { %v311_v21 = vpop.xlane.xlu1 %310 }
 0x29d   : > { %v312_v22 = vrot.slane %v311_v21, 4 }
 0x29f   : > { %v313_v23 = vmax.f32 %v311_v21, %v312_v22 }
 0x2a0   : > { %v259_v24 = vpop.xlane.xlu1 %258 }
 0x2a1   : > { %v314_v25 = vrot.slane %v313_v23, 2  ;;  %v260_v26 = vmax.f32 %v259_v24, 1e-24  ;;  %v344_v24 = vld [vmem:[#allocation5] sm:$0x1] }
 0x2a3   : > { %v315_v27 = vmax.f32 %v313_v23, %v314_v25  ;;  %695 = vrsqrt.f32 %v260_v26  ;;  %v327_v23 = vld [vmem:[#allocation4] sm:$0x1] }
 0x2a5   : > { %v316_v28 = vrot.slane %v315_v27, 1 }
 0x2a7   : > { %v317_v30 = vmax.f32 %v315_v27, %v316_v28 }
 0x2a9   : > { %v318_v31 = vsub.f32 %v302_v15, %v317_v30  ;;  %v359_v32 = vmax.f32 %v358_v29, %v317_v30 }
 0x2ab   : > { %v319_v33 = vmul.f32 1.442695, %v318_v31  ;;  %378 = vst.msk [vmem:[#allocation2] sm:$0x1] %vm234_vm3, %v359_v32  ;;  %v361_v37 = vsub.f32 %v358_v29, %v359_v32  ;;  %v371_v38 = vsub.f32 %v317_v30, %v359_v32 }
 0x2ad   : > { %v696_v34 = vpop.eup %695  ;;  %697 = vpow2.f32 %v319_v33  ;;  %v362_v39 = vmul.f32 1.442695, %v361_v37  ;;  %v372_v40 = vmul.f32 1.442695, %v371_v38 }
 0x2ae   : > { %v262_v35 = vmul.f32 %v696_v34, %v241_v0 }
 0x2af   : > { %699 = vpow2.f32 %v362_v39 }
 0x2b0   : > { %v263_v36 = vmul.f32 %v262_v35, %v247_v13  ;;  %701 = vpow2.f32 %v372_v40 }
 0x2b2   : > { %264 = vadd.xlane.f32.xlu1 %v263_v36  ;;  %v382_v1 = vld [vmem:[#allocation2] sm:$0x1] }
 0x2b7   : > { %v698_v41 = vpop.eup %697 }
 0x2b8   : > { %v321_v42 = vsel %vm308_vm2, %v698_v41, 0.0 }
 0x2b9   : > { %322 = vadd.xlane.f32.xlu0 %v321_v42  ;;  %v365_v43 = vrot.slane %v321_v42, 4  ;;  %v700_v48 = vpop.eup %699 }
 0x2ba   : > { %v702_v51 = vpop.eup %701  ;;  %v364_v52 = vmul.f32 %v700_v48, %v360_v49 }
 0x2bb   : > { %v366_v44 = vadd.f32 %v365_v43, %v321_v42 }
 0x2bd   : > { %v367_v45 = vrot.slane %v366_v44, 2 }
 0x2bf   : > { %v368_v46 = vadd.f32 %v367_v45, %v366_v44 }
 0x2c1   : > { %v369_v47 = vrot.slane %v368_v46, 1 }
 0x2c3   : > { %v370_v50 = vadd.f32 %v369_v47, %v368_v46 }
 0x2c5   : > { %v374_v53 = vmul.f32 %v702_v51, %v370_v50 }
 0x2c7   : > { %v375_v54 = vadd.f32 %v374_v53, %v364_v52 }
 0x2c9   : > { %377 = vst.msk [vmem:[#allocation3] sm:$0x1] %vm234_vm3, %v375_v54 }
 0x2d0   : > { %v383_v57 = vld [vmem:[#allocation3] sm:$0x1] }
 0x2d1   : > { %703 = vlog2.f32 %v383_v57 }
 0x2db   : > { %v704_v59 = vpop.eup %703 }
 0x2dc   : > { %v385_v63 = vmul.f32 0.6931472, %v704_v59 }
 0x2de   : > { %v386_v3 = vadd.f32 %v385_v63, %v382_v1 }
 0x2e0   : > { %v391_v4 = vsel %vm234_vm3, %v386_v3, 0.0 }
 0x33f   : > { %v265_v55 = vpop.xlane.xlu1 %264 }
 0x340   : > { %v345_v56 = vsel %vm329_vm4, %v265_v55, 0.0 }
 0x341   : > { %346 = vadd.xlane.f32.xlu1 %v345_v56 }
 0x346   : > { %v323_v58 = vpop.xlane.xlu0 %322 }
 0x347   : > { %705 = vlog2.f32 %v323_v58 }
 0x351   : > { %v706_v60 = vpop.eup %705 }
 0x352   : > { %v325_v61 = vmul.f32 0.6931472, %v706_v60 }
 0x354   : > { %v326_v62 = vadd.f32 %v325_v61, %v317_v30 }
 0x356   : > { %v328_v0 = vsub.f32 %v326_v62, %v265_v55 }
 0x358   : > { %v330_v2 = vsel %vm329_vm4, %v328_v0, 0.0 }
 0x359   : > { %331 = vadd.xlane.f32.xlu0 %v330_v2 }
 0x35d   : > { %392 = vadd.xlane.f32.xlu0 %v391_v4 }
 0x3ce   : > { %v347_v5 = vpop.xlane.xlu1 %346 }
 0x3cf   : > { %v348_v6 = vrot.slane %v347_v5, 4 }
 0x3d1   : > { %v349_v7 = vadd.f32 %v348_v6, %v347_v5 }
 0x3d3   : > { %v350_v8 = vrot.slane %v349_v7, 2 }
 0x3d5   : > { %v351_v12 = vadd.f32 %v350_v8, %v349_v7 }
 0x3d7   : > { %v352_v15 = vrot.slane %v351_v12, 1 }
 0x3d9   : > { %v353_v18 = vadd.f32 %v352_v15, %v351_v12 }
 0x3e6   : > { %v332_v9 = vpop.xlane.xlu0 %331 }
 0x3e7   : > { %v333_v10 = vrot.slane %v332_v9, 4 }
 0x3e9   : > { %v334_v11 = vadd.f32 %v333_v10, %v332_v9 }
 0x3ea   : > { %v393_v19 = vpop.xlane.xlu0 %392 }
 0x3eb   : > { %v335_v13 = vrot.slane %v334_v11, 2  ;;  %v394_v20 = vrot.slane %v393_v19, 4 }
 0x3ed   : > { %v336_v14 = vadd.f32 %v335_v13, %v334_v11  ;;  %v395_v21 = vadd.f32 %v394_v20, %v393_v19 }
 0x3ef   : > { %v337_v16 = vrot.slane %v336_v14, 1  ;;  %v396_v22 = vrot.slane %v395_v21, 2 }
 0x3f1   : > { %v338_v17 = vadd.f32 %v337_v16, %v336_v14  ;;  %v397_v28 = vadd.f32 %v396_v22, %v395_v21 }
 0x3f3   : > { %553 = vpush %v338_v17  ;;  %v398_v30 = vrot.slane %v397_v28, 1 }
 0x3f4   : > { %555 = vpush %v353_v18 }
 0x3f5   : > { %v399_v32 = vadd.f32 %v398_v30, %v397_v28 }
 0x424   : > { %s554_s24 = spop %553 }
 0x425   : > { %v340_v25 = vstv %s554_s24  ;;  %s556_s27 = spop %555  ;;  %s1238_s24 = scalar_lea.hbm %s1306_s4, %s542_s5 }
 0x426   : > { %v341_v26 = vadd.f32 %v340_v25, %v327_v23  ;;  %v355_v27 = vstv %s556_s27  ;;  %s412_s27 = scalar_lea.sflag [#allocation11], %s224_s30 }
 0x427   : > { %v356_v29 = vadd.f32 %v355_v27, %v344_v24 }
 0x428   : > { %343 = vst.msk [vmem:[#allocation4] sm:$0x1] %vm237_vm0, %v341_v26 }
 0x429   : > { %357 = vst.msk [vmem:[#allocation5] sm:$0x1] %vm237_vm0, %v356_v29 }
 0x42f   : > { %v387_v31 = vld [vmem:[#allocation4] sm:$0x1] }
 0x430   : > { %557 = vpush %v387_v31  ;;  %v401_v33 = vld [vmem:[#allocation5] sm:$0x1] }
 0x431   : > { %559 = vpush %v399_v32 }
 0x432   : > { %561 = vpush %v401_v33 }
 0x461   : > { %s558_s20 = spop %557 }
 0x462   : > { %s560_s14 = spop %559  ;;  %s390_s10 = smul.f32 0.125, %s558_s20 }
 0x463   : > { %s562_s18 = spop %561  ;;  %s789_s20 = scalar_lea.vmem %s1240_s8, 128 }
 0x464   : > { %s404_s23 = ssub.f32 %s560_s14, %s562_s18  ;;  %p790_p11 = scmp.ne.s32.totalorder %s1240_s8, %s789_s20 }
 0x465   : > { %s793_s14 = sshll.u32 %s934_s11, 4  ;;  %s794_s14 = int_to_ptr.vmem [resolvable:$false] %s793_s14 }
 0x466   : > { %s405_s2 = smul.f32 0.125, %s404_s23  ;;  %p791_p3 = pnand %p790_p11, %p1336_p5 }
 0x467   : > { %s795_s25 = scalar_lea.vmem %s794_s14, 256  ;;  %p796_p1 = scmp.lt.s32.totalorder %s1240_s8, %s794_s14 }
 0x468   : > { %s406_s17 = sadd.f32 %s405_s2, %s390_s10  ;;  %p792_p6 = pneg %p791_p3 }
 0x469   : > { %p797_p12 = scmp.lt.s32.totalorder %s795_s25, %s789_s20 }
 0x46a   : > { %s407_s21 = smul.f32 0.5, %s406_s17 }
 0x46b   : > { %p798_p13 = por %p797_p12, %p796_p1 }
 0x46c   : > { %v408_v34 = vstv %s407_s21 }
 0x46d   : > { %410 = vst [vmem:[%s226_s15] sm:$0xff] %v408_v34  ;;  %p799_p7 = pnand %p798_p13, %p792_p6 }
 0x46f   : > { %802 = shalt.err (!%p799_p7)
}
 0x470   : > { %s803_s30 = scalar_lea.hbm %s1238_s24, 128  ;;  %s807_s10 = scalar_lea.hbm %s1306_s4, 384 }
 0x471   : > { %p804_p2 = scmp.ne.s32.totalorder %s1238_s24, %s803_s30  ;;  %p808_p8 = scmp.lt.u32.totalorder %s1238_s24, %s1306_s4 }
 0x472   : > { %p809_p10 = scmp.lt.u32.totalorder %s807_s10, %s803_s30  ;;  %p811_p11 = scmp.lt.u32.totalorder %s803_s30, %s1238_s24 }
 0x473   : > { %p805_p0 = pnand %p804_p2, %p1336_p5 }
 0x474   : > { %p810_p9 = por %p809_p10, %p808_p8 }
 0x475   : > { %p806_p4 = pneg %p805_p0 }
 0x476   : > { %p812_p3 = por %p811_p11, %p810_p9 }
 0x478   : > { %p813_p6 = pnand %p812_p3, %p806_p4 }
 0x47a   : > { %816 = shalt.err (!%p813_p6)
}
 0x47b   : > { %571 = dma.vmem_to_hbm [thread:$0]  (%p1336_p5), %s1240_s8, 128, %s1238_s24, %s412_s27  }
 0x47c PF: > { %p589_p1 = scmp.ge.s32.totalorder %s925_s13, 2  ;;  %s437_s17 = sand.u32 1, %s881_s0  }
 0x47d   : > { %p1337_p12 = scmp.ne.s32.totalorder %s1322_s28, 0  ;;  %s438_s15 = scalar_lea.sflag [#allocation11], %s437_s17 }
 0x47f   : > { %p585_p13 = pnand %p589_p1, %p1337_p12 }
 0x481   : > { %876 = dma.done.wait (!%p585_p13), %s438_s15, 128  }
 0x482   : > { %878 = vsyncadd (!%p585_p13), %s438_s15, 4294967168  ;;  %s31_s13 = sadd.s32 1, %s925_s13   ;;  %s1338_s21 = sld [smem:[#allocation23_spill]] }
 0x483   : > { %p28_p7 = scmp.ge.s32.totalorder %s31_s13, 5   ;;  %s1339_s30 = sld [smem:[#allocation25_spill]] }
 0x484   : > { %s1340_s26 = sld [smem:[#allocation24_spill]]  ;;  %s1341_s10 = sld [smem:[#allocation26_spill]] }
 0x485   : > { %s1342_s0 = smov %s885_s1  ;;  %s1344_s5 = smov %s897_s6 }
 0x486   : > { %s1345_s6 = smov %s901_s7  ;;  %s1346_s7 = smov %s1171_s22 }
 0x487   : > { %s1347_s8 = smov %s909_s9  ;;  %s1349_s11 = smov %s921_s12 }
 0x488   : > { %s1343_s1 = smov %s1338_s21  ;;  %s1350_s12 = smov %s1352_s16 }
 0x489   :  { %30 = sbr.rel (!%p28_p7) target bundleno = 33 (0x21), region = 95 }
 0x48a   : > { %s1348_s9 = smov %s1340_s26 }
 0x490   :  { %443 = vsyncpa [#allocation10], 1 }
 0x491   :  { %445 = vsyncpa [#allocation10 + $0x1], 1 }
 0x492   :  { %446 = vsyncpa [#allocation13], 1 }
 0x493   :  { %448 = vsyncpa [#allocation13 + $0x1], 1 }
 0x494   :  { %449 = vsyncpa [#allocation11], 1 }
 0x495   :  { %451 = vsyncpa [#allocation11 + $0x1], 1 }

</bundles_post_ra>
